<compile_context>
chip_gen: v6e
topology: v6e:2x2x1
jax: 0.10.0
libtpu: 0.0.40
codegen_flags: <defaults>
</compile_context>

<pallas_src>
import math
from typing import NamedTuple, Optional

import jax
import jax.numpy as jnp
from jax.experimental import pallas as pl
from jax.experimental.pallas import tpu as pltpu

_MIB = 1024 * 1024


# -----------------------------------------------------------------------------
# Kernel
# -----------------------------------------------------------------------------
def _classifier_kernel(x_ref, w_ref, b_ref, o_ref, acc_ref):
    """Output-stationary tiled matmul:  o[i,j] = sum_k x[i,k] @ w[k,j] + b[j].

    x_ref:  (tm, tk)  activations tile
    w_ref:  (tk, tn)  weight tile, cached as (in_features, num_classes)
    b_ref:  (1,  tn)  bias tile (f32)
    o_ref:  (tm, tn)  output tile
    acc_ref:(tm, tn)  f32 accumulator (persists across the k grid axis)
    """
    k = pl.program_id(2)

    partial = jnp.dot(x_ref[...], w_ref[...], preferred_element_type=jnp.float32)

    @pl.when(k == 0)
    def _():
        # Fold the bias into the first k-step: a single assignment, no separate
        # broadcast store + read-modify-write pass on the accumulator.
        acc_ref[...] = b_ref[...].astype(jnp.float32) + partial

    @pl.when(k > 0)
    def _():
        acc_ref[...] += partial

    @pl.when(k == pl.num_programs(2) - 1)
    def _():
        o_ref[...] = acc_ref[...].astype(o_ref.dtype)


# -----------------------------------------------------------------------------
# VMEM / tiling heuristics
# -----------------------------------------------------------------------------
def _round_up(a, b):
    return ((a + b - 1) // b) * b


def _vmem_config():
    """Return (tile budget bytes, physical per-core VMEM bytes or None)."""
    cap = None
    try:
        info = pltpu.get_tpu_info()
        cap = getattr(info, "vmem_capacity_bytes", None)
    except Exception:
        cap = None
    if cap is None:
        # Conservative default that is safe on every generation (v7x has the
        # smallest per-TensorCore VMEM at 64 MiB).
        return 48 * _MIB, None
    if cap >= 100 * _MIB:
        # v5e / v6e: 128 MiB per TensorCore -> let tiles grow.
        return 96 * _MIB, cap
    # v7x: 64 MiB per TensorCore -> keep >=16 MiB headroom for Mosaic scratch.
    return max(32 * _MIB, min(cap - 16 * _MIB, 48 * _MIB)), cap


def _footprint(tm, tn, tk, in_bytes, out_bytes):
    """Double-buffered inputs (x, w, f32 bias) + double-buffered output + f32 acc."""
    inputs = 2 * (tm * tk + tk * tn) * in_bytes + 2 * tn * 4
    outputs = 2 * tm * tn * out_bytes
    acc = tm * tn * 4
    return inputs + outputs + acc


def _choose_tiles(M, N, K, in_bytes, out_bytes, budget):
    """Balanced tm~tn (HBM re-read traffic ~ 1/tm + 1/tn), tk grown aggressively."""
    Ma = _round_up(max(M, 1), 8)
    Na = _round_up(max(N, 1), 128)
    Ka = _round_up(max(K, 1), 128)

    for t in (2048, 1024, 512, 256, 128):
        tm = min(Ma, t)
        tn = min(Na, t)
        tk = min(Ka, 4096)  # prefer tk == K: fewer grid steps, fewer acc RMW passes
        while tk > 128 and _footprint(tm, tn, tk, in_bytes, out_bytes) > budget:
            tk = max(128, _round_up(tk // 2, 128))
        if _footprint(tm, tn, tk, in_bytes, out_bytes) <= budget:
            return tm, tn, tk
    return min(Ma, 128), min(Na, 128), min(Ka, 128)


def _choose_tm(M, tn, tk, in_bytes, out_bytes, budget):
    tm = min(_round_up(max(M, 1), 8), 2048)
    while tm > 8 and _footprint(tm, tn, tk, in_bytes, out_bytes) > budget:
        tm = max(8, _round_up(tm // 2, 8))
    return tm


# -----------------------------------------------------------------------------
# One-time weight preparation (hoist cast/transpose/pad out of the forward path)
# -----------------------------------------------------------------------------
class PreparedClassifierParams(NamedTuple):
    w_kn: jax.Array      # (Kp, Np) compute dtype: weight.T, cast + tile-padded once
    b_row: jax.Array     # (1, Np) float32 bias row (zeros if bias=None)
    num_classes: int
    in_features: int
    tn: int
    tk: int


def prepare_classifier_params(
    weight,
    bias=None,
    *,
    compute_dtype=jnp.bfloat16,
    tn: Optional[int] = None,
    tk: Optional[int] = None,
    expected_tokens: int = 2048,
    vmem_budget_bytes: Optional[int] = None,
) -> PreparedClassifierParams:
    """Cast, transpose to (K, N) and tile-pad the vocab weight ONCE.

    Cache the result next to the module parameters and pass it to
    `vocab_parallel_classifier_3d(..., prepared=...)` so the (potentially
    multi-GiB) weight is not re-materialized in HBM on every forward call.
    """
    N, K = weight.shape
    budget = (int(vmem_budget_bytes) if vmem_budget_bytes is not None
              else _vmem_config()[0])
    in_bytes = jnp.dtype(compute_dtype).itemsize
    _, tn0, tk0 = _choose_tiles(expected_tokens, N, K, in_bytes, 4, budget)
    tn = int(tn or tn0)
    tk = int(tk or tk0)

    Np, Kp = _round_up(N, tn), _round_up(K, tk)
    w_kn = weight.astype(compute_dtype).T          # (K, N): kernel never transposes
    if (Kp, Np) != (K, N):
        w_kn = jnp.pad(w_kn, ((0, Kp - K), (0, Np - N)))
    b = (jnp.zeros((N,), jnp.float32) if bias is None
         else bias.astype(jnp.float32))
    if Np != N:
        b = jnp.pad(b, (0, Np - N))
    return PreparedClassifierParams(w_kn, b.reshape(1, Np), N, K, tn, tk)


# -----------------------------------------------------------------------------
# Forward wrapper
# -----------------------------------------------------------------------------
def vocab_parallel_classifier_3d(
    x,
    weight=None,
    bias=None,
    *,
    prepared: Optional[PreparedClassifierParams] = None,
    tm=None,
    tn=None,
    tk=None,
    compute_dtype=jnp.bfloat16,
    out_dtype=None,
    vmem_budget_bytes=None,
):
    """y = x @ weight.T + bias, computed in a Pallas TPU kernel.

    x:        (..., in_features)
    weight:   (num_classes, in_features) -- native nn.Linear layout (used when
              `prepared` is None; a cached transposed copy is built internally).
    bias:     (num_classes,) or None
    prepared: output of prepare_classifier_params (recommended: build once).
    returns   (..., num_classes) in `out_dtype` (default: x.dtype; bf16 halves
              the logits writeback and the output double-buffer).
    """
    *lead, K_in = x.shape
    M = int(math.prod(lead)) if lead else 1
    out_dtype = out_dtype or x.dtype

    if vmem_budget_bytes is not None:
        budget, cap = int(vmem_budget_bytes), None
    else:
        budget, cap = _vmem_config()

    in_bytes = jnp.dtype(compute_dtype).itemsize
    out_bytes = jnp.dtype(out_dtype).itemsize

    if prepared is None:
        assert weight is not None, "pass either `weight` or `prepared`"
        N, K = weight.shape
        assert K == K_in, f"in_features mismatch: {K} vs {K_in}"
        tm0, tn0, tk0 = _choose_tiles(M, N, K, in_bytes, out_bytes, budget)
        prepared = prepare_classifier_params(
            weight, bias, compute_dtype=compute_dtype,
            tn=(tn or tn0), tk=(tk or tk0), vmem_budget_bytes=budget)
        if tm is None:
            tm = tm0
    else:
        N, K = prepared.num_classes, prepared.in_features
        assert K == K_in, f"in_features mismatch: {K} vs {K_in}"

    tn, tk = prepared.tn, prepared.tk
    if tm is None:
        tm = _choose_tm(M, tn, tk, in_bytes, out_bytes, budget)

    # Megacore (v7x has 2 TensorCores): make sure the parallel grid axes have
    # at least 2 blocks so one core is not idle; harmless on v5e/v6e.
    gi = -(-M // tm)
    gj = -(-N // tn)
    if gi == 1 and gj == 1 and tn % 256 == 0 and N > tn // 2:
        tn //= 2  # Np (multiple of the original tn) remains divisible by tn//2

    Kp, Np = prepared.w_kn.shape
    assert Np % tn == 0 and Kp % tk == 0

    # Pad the activations (zero padding is exact for a matmul).
    x2 = x.reshape(M, K).astype(compute_dtype)
    Mp = _round_up(M, tm)
    if (Mp, Kp) != (M, K):
        x2 = jnp.pad(x2, ((0, Mp - M), (0, Kp - K)))

    gi, gj, gk = Mp // tm, Np // tn, Kp // tk
    grid = (gi, gj, gk)

    fp = _footprint(tm, tn, tk, in_bytes, out_bytes)

    # HBM traffic including tile re-read factors (weight re-read gi times,
    # activations re-read gj times) so XLA schedules surrounding ops sensibly.
    cost = pl.CostEstimate(
        flops=2 * Mp * Np * Kp,
        transcendentals=0,
        bytes_accessed=(gi * Np * Kp + gj * Mp * Kp) * in_bytes
        + Mp * Np * out_bytes
        + gi * Np * 4,
    )

    # vmem_limit: enough for the pipeline, but always leave Mosaic headroom
    # below physical VMEM (notably on v7x's 64 MiB per-TensorCore VMEM).
    ceiling = (cap - 8 * _MIB) if cap is not None else (budget + 8 * _MIB)
    vmem_limit_bytes = int(min(max(int(1.25 * fp), 32 * _MIB), ceiling, 120 * _MIB))
    vmem_limit_bytes = max(vmem_limit_bytes, int(fp) + 2 * _MIB)

    out2 = pl.pallas_call(
        _classifier_kernel,
        out_shape=jax.ShapeDtypeStruct((Mp, Np), out_dtype),
        grid_spec=pltpu.PrefetchScalarGridSpec(
            num_scalar_prefetch=0,
            grid=grid,
            in_specs=[
                pl.BlockSpec((tm, tk), lambda i, j, k: (i, k)),   # activations (M, K)
                pl.BlockSpec((tk, tn), lambda i, j, k: (k, j)),   # weight cached as (K, N)
                pl.BlockSpec((1, tn), lambda i, j, k: (0, j)),    # bias row
            ],
            out_specs=pl.BlockSpec((tm, tn), lambda i, j, k: (i, j)),
            scratch_shapes=[pltpu.VMEM((tm, tn), jnp.float32)],
        ),
        compiler_params=pltpu.CompilerParams(
            dimension_semantics=("parallel", "parallel", "arbitrary"),
            vmem_limit_bytes=vmem_limit_bytes,
        ),
        cost_estimate=cost,
    )(x2, prepared.w_kn, prepared.b_row)

    if (Mp, Np) != (M, N):
        out2 = out2[:M, :N]
    return out2.reshape(*lead, N)


# -----------------------------------------------------------------------------
# Parameter init (mirrors the module's __init__ at depth == 1)
# -----------------------------------------------------------------------------
def init_params(key, in_features, num_classes, dtype=jnp.float32):
    kw, kb = jax.random.split(key)
    # kaiming_uniform_(a=sqrt(5)), fan_in = in_features -> bound = 1/sqrt(fan_in)
    w_bound = 1.0 / math.sqrt(in_features)
    weight = jax.random.uniform(
        kw, (num_classes, in_features), dtype, minval=-w_bound, maxval=w_bound
    )
    # xavier-style uniform bias init with fan_in = in_features
    b_bound = math.sqrt(3.0 / in_features)
    bias = jax.random.uniform(
        kb, (num_classes,), dtype, minval=-b_bound, maxval=b_bound
    )
    return weight, bias


# -----------------------------------------------------------------------------
# Demo / correctness check
# -----------------------------------------------------------------------------
def _reference(x, weight, bias, compute_dtype=jnp.bfloat16):
    # Same bf16 input rounding as the kernel, f32 accumulation.
    xf = x.astype(compute_dtype).astype(jnp.float32)
    wf = weight.astype(compute_dtype).astype(jnp.float32)
    return jnp.einsum("...k,nk->...n", xf, wf) + bias.astype(jnp.float32)


if __name__ == "__main__":
    key = jax.random.PRNGKey(0)

    # ---- test 1: small shapes, heuristic tiles, f32 output ----------------
    batch, seq, in_features, num_classes = 2, 8, 32, 64
    k_x, k_p, k_x2, k_p2 = jax.random.split(key, 4)

    x = jax.random.normal(k_x, (batch, seq, in_features), dtype=jnp.float32)
    weight, bias = init_params(k_p, in_features, num_classes)

    y = jax.block_until_ready(vocab_parallel_classifier_3d(x, weight, bias))
    y_ref = _reference(x, weight, bias)
    assert y.shape == (batch, seq, num_classes)
    assert jnp.allclose(y, y_ref, atol=2e-3, rtol=2e-3)

    # ---- test 2: cached prepared weights, explicit multi-block grid, bf16 out
    b2_, s2_, k2_, n2_ = 2, 64, 256, 384
    x_b = jax.random.normal(k_x2, (b2_, s2_, k2_), dtype=jnp.float32)
    w_b, bias_b = init_params(k_p2, k2_, n2_)

    prepared = prepare_classifier_params(w_b, bias_b, tn=128, tk=128)
    y_b = jax.block_until_ready(
        vocab_parallel_classifier_3d(
            x_b, prepared=prepared, tm=64, out_dtype=jnp.bfloat16
        )
    )
    y_b_ref = _reference(x_b, w_b, bias_b)
    assert y_b.shape == (b2_, s2_, n2_)
    assert y_b.dtype == jnp.bfloat16
    assert jnp.allclose(y_b.astype(jnp.float32), y_b_ref, atol=2e-2, rtol=2e-2)

    print("KERNEL_OK")
</pallas_src>

<mosaic_0001>
module attributes {stable_mosaic.version = 11 : i64} {
  func.func @_classifier_kernel(%arg0: i32, %arg1: i32, %arg2: i32, %arg3: memref<16x128xbf16, #tpu.memory_space<vmem>>, %arg4: memref<128x128xbf16, #tpu.memory_space<vmem>>, %arg5: memref<1x128xf32, #tpu.memory_space<vmem>>, %arg6: memref<16x128xf32, #tpu.memory_space<vmem>>, %arg7: memref<16x128xf32, #tpu.memory_space<vmem>>) attributes {dimension_semantics = [#tpu.dimension_semantics<parallel>, #tpu.dimension_semantics<parallel>, #tpu.dimension_semantics<arbitrary>], iteration_bounds = array<i64: 1, 1, 1>, scalar_prefetch = 0 : i64, scratch_operands = 1 : i64, tpu.core_type = #tpu.core_type<tc>, window_params = [{transform_indices = @transform_0, window_bounds = array<i64: 16, 128>}, {transform_indices = @transform_1, window_bounds = array<i64: 128, 128>}, {transform_indices = @transform_2, window_bounds = array<i64: 1, 128>}, {transform_indices = @transform_3, window_bounds = array<i64: 16, 128>}]} {
    %c0 = arith.constant 0 : index
    %c0_0 = arith.constant 0 : index
    %0 = vector.load %arg3[%c0, %c0_0] : memref<16x128xbf16, #tpu.memory_space<vmem>>, vector<16x128xbf16>
    %c0_1 = arith.constant 0 : index
    %c0_2 = arith.constant 0 : index
    %1 = vector.load %arg4[%c0_1, %c0_2] : memref<128x128xbf16, #tpu.memory_space<vmem>>, vector<128x128xbf16>
    %cst = arith.constant dense<0.000000e+00> : vector<16x128xf32>
    %2 = tpu.matmul %0, %1, %cst {dimension_numbers = #tpu.dot_dimension_numbers<[1], [0], [0], [1], [0, 0, 1, 1], [], []>} : vector<16x128xbf16>, vector<128x128xbf16>, vector<16x128xf32> -> vector<16x128xf32>
    %c0_i32 = arith.constant 0 : i32
    %3 = arith.cmpi eq, %arg2, %c0_i32 : i32
    %4 = arith.extui %3 : i1 to i32
    %c0_i32_3 = arith.constant 0 : i32
    %5 = arith.cmpi ne, %4, %c0_i32_3 : i32
    scf.if %5 {
      %c0_8 = arith.constant 0 : index
      %c0_9 = arith.constant 0 : index
      %12 = vector.load %arg5[%c0_8, %c0_9] : memref<1x128xf32, #tpu.memory_space<vmem>>, vector<1x128xf32>
      %13 = vector.broadcast %12 : vector<1x128xf32> to vector<16x128xf32>
      %14 = arith.addf %13, %2 : vector<16x128xf32>
      %c0_10 = arith.constant 0 : index
      %c0_11 = arith.constant 0 : index
      %15 = vector.load %arg7[%c0_10, %c0_11] : memref<16x128xf32, #tpu.memory_space<vmem>>, vector<16x128xf32>
      tpu.vector_store %arg7[%c0_10, %c0_11], %14 {strides = array<i32>} : memref<16x128xf32, #tpu.memory_space<vmem>>, vector<16x128xf32>,
    } else {
    }
    %c0_i32_4 = arith.constant 0 : i32
    %6 = arith.cmpi sgt, %arg2, %c0_i32_4 : i32
    %7 = arith.extui %6 : i1 to i32
    %c0_i32_5 = arith.constant 0 : i32
    %8 = arith.cmpi ne, %7, %c0_i32_5 : i32
    scf.if %8 {
      %c0_8 = arith.constant 0 : index
      %c0_9 = arith.constant 0 : index
      %12 = vector.load %arg7[%c0_8, %c0_9] : memref<16x128xf32, #tpu.memory_space<vmem>>, vector<16x128xf32>
      %13 = arith.addf %12, %2 : vector<16x128xf32>
      %c0_10 = arith.constant 0 : index
      %c0_11 = arith.constant 0 : index
      %14 = vector.load %arg7[%c0_10, %c0_11] : memref<16x128xf32, #tpu.memory_space<vmem>>, vector<16x128xf32>
      tpu.vector_store %arg7[%c0_10, %c0_11], %13 {strides = array<i32>} : memref<16x128xf32, #tpu.memory_space<vmem>>, vector<16x128xf32>,
    } else {
    }
    %c0_i32_6 = arith.constant 0 : i32
    %9 = arith.cmpi eq, %arg2, %c0_i32_6 : i32
    %10 = arith.extui %9 : i1 to i32
    %c0_i32_7 = arith.constant 0 : i32
    %11 = arith.cmpi ne, %10, %c0_i32_7 : i32
    scf.if %11 {
      %c0_8 = arith.constant 0 : index
      %c0_9 = arith.constant 0 : index
      %12 = vector.load %arg7[%c0_8, %c0_9] : memref<16x128xf32, #tpu.memory_space<vmem>>, vector<16x128xf32>
      %c0_10 = arith.constant 0 : index
      %c0_11 = arith.constant 0 : index
      %13 = vector.load %arg6[%c0_10, %c0_11] : memref<16x128xf32, #tpu.memory_space<vmem>>, vector<16x128xf32>
      tpu.vector_store %arg6[%c0_10, %c0_11], %12 {strides = array<i32>} : memref<16x128xf32, #tpu.memory_space<vmem>>, vector<16x128xf32>,
    } else {
    }
    return
  }
  func.func @transform_0(%arg0: i32, %arg1: i32, %arg2: i32) -> (i32, i32) {
    %c0_i32 = arith.constant 0 : i32
    return %arg0, %arg2 : i32, i32
  }
  func.func @transform_1(%arg0: i32, %arg1: i32, %arg2: i32) -> (i32, i32) {
    %c0_i32 = arith.constant 0 : i32
    return %arg2, %arg1 : i32, i32
  }
  func.func @transform_2(%arg0: i32, %arg1: i32, %arg2: i32) -> (i32, i32) {
    %c0_i32 = arith.constant 0 : i32
    %c0_i32_0 = arith.constant 0 : i32
    return %c0_i32, %arg1 : i32, i32
  }
  func.func @transform_3(%arg0: i32, %arg1: i32, %arg2: i32) -> (i32, i32) {
    %c0_i32 = arith.constant 0 : i32
    return %arg0, %arg1 : i32, i32
  }
}

</mosaic_0001>

<bundles_post_ra>
// kernel: tpu_custom_call.1
= control target key start
LH: loop header
LB: loop body
LE: loop exit
PB: predicated region body
PF: predicated region fallthrough
CT: control target
= control target key end

     0   :  { %8 = vsyncpa [#allocation4], 0  ;;  %s371_s0 = inlined_call_operand.hbm [shape: bf16[16,128], index: 0, kind: input, shape index: {}]   ;;  %s372_s1 = inlined_call_operand.hbm [shape: bf16[128,128], index: 1, kind: input, shape index: {}]   ;;  %s373_s2 = inlined_call_operand.vmem [shape: f32[1,128], index: 2, kind: input, shape index: {}]   ;;  %s374_s3 = inlined_call_operand.hbm [shape: f32[16,128], index: 3, kind: output, shape index: {}]  }
   0x1   :  { %9 = vsyncpa [#allocation7], 0 }
   0x2   :  { %10 = vsyncpa [#allocation5], 0  ;;  %s330_s12 = smov [#allocation3]  }
   0x3   :  { %s16_s13 = sshll.u32 %s330_s12, 4  ;;  %s17_s13 = int_to_ptr.vmem [resolvable:$true] %s16_s13 }
   0x4   :  { %s272_s14 = scalar_lea.vmem %s17_s13, 128  ;;  %p277_p1 = scmp.lt.s32.totalorder %s17_s13, %s17_s13 }
   0x5   :  { %p273_p0 = scmp.ne.s32.totalorder %s17_s13, %s272_s14  ;;  %p278_p2 = scmp.lt.s32.totalorder %s272_s14, %s272_s14 }
   0x7   :  { %p279_p3 = por %p278_p2, %p277_p1 }
   0x9   :  { %p280_p4 = pnand %p279_p3, %p273_p0 }
   0xb   :  { %283 = shalt.err (!%p280_p4)
}
   0xc   :  { %s331_s15 = smov 64   ;;  %s332_s16 = smov 4  }
   0xd   :  { %22 = dma.hbm_to_vmem [thread:$0]  %s371_s0, 128, %s17_s13, [#allocation4], %s331_s15, %s331_s15, %s332_s16  }
   0xe   :  { %s333_s19 = smov [#allocation6]  }
   0xf   :  { %s28_s20 = sshll.u32 %s333_s19, 4  ;;  %s29_s20 = int_to_ptr.vmem [resolvable:$true] %s28_s20 }
  0x10   :  { %s292_s21 = scalar_lea.vmem %s29_s20, 1024  ;;  %p297_p6 = scmp.lt.s32.totalorder %s29_s20, %s29_s20 }
  0x11   :  { %p293_p5 = scmp.ne.s32.totalorder %s29_s20, %s292_s21  ;;  %p298_p7 = scmp.lt.s32.totalorder %s292_s21, %s292_s21 }
  0x13   :  { %p299_p8 = por %p298_p7, %p297_p6 }
  0x15   :  { %p300_p9 = pnand %p299_p8, %p293_p5 }
  0x17   :  { %303 = shalt.err (!%p300_p9)
}
  0x18   :  { %34 = dma.hbm_to_vmem [thread:$0]  %s372_s1, 1024, %s29_s20, [#allocation7], %s331_s15, %s331_s15, %s332_s16  }
  0x19   :  { %324 = dma.done.wait [#allocation4], 128  }
  0x1a   :  { %325 = vsyncadd [#allocation4], 4294967168 }
  0x1b   :  { %326 = dma.done.wait [#allocation7], 1024  }
  0x1c   :  { %327 = vsyncadd [#allocation7], 4294966272  ;;  %v334_v0 = vmov 0.0   ;;  %vm335_vm0 = vmmov 0   ;;  %v255_v1 = vld [vmem:[#allocation6 + $0x38] sm:$0xff]   ;;  %v256_v2 = vld [vmem:[#allocation6 + $0x30] sm:$0xff]  }
  0x1d   :  { %226 = vmatprep.subr.bf16.mxu0 %v334_v0  ;;  %242 = vmatprep.mubr.msk.bf16.mxu0 %vm335_vm0, %v334_v0  ;;  %v257_v3 = vld [vmem:[#allocation6 + $0x28] sm:$0xff]   ;;  %v258_v4 = vld [vmem:[#allocation6 + $0x20] sm:$0xff]   ;;  %v259_v5 = vld [vmem:[#allocation6 + $0x18] sm:$0xff]   ;;  %s336_s24 = smov [#allocation8]  }
  0x1e   :  { %227 = vmatpush3.bf16.msra.mxu0 %v255_v1  ;;  %v260_v6 = vld [vmem:[#allocation6 + $0x10] sm:$0xff]   ;;  %v261_v7 = vld [vmem:[#allocation6 + $0x8] sm:$0xff]   ;;  %v262_v8 = vld [vmem:[#allocation6] sm:$0xff]   ;;  %s194_s25 = sshll.u32 %s336_s24, 4  ;;  %s195_s25 = int_to_ptr.vmem [resolvable:$true] %s194_s25 }
  0x1f   :  { %228 = vmatprep.subr.bf16.mxu0 %v334_v0  ;;  %v263_v9 = vld [vmem:[#allocation3] sm:$0xff]   ;;  %s304_s26 = scalar_lea.vmem %s195_s25, 256  ;;  %p309_p11 = scmp.lt.s32.totalorder %s195_s25, %s195_s25 }
  0x20   :  { %v216_v10 = vld [vmem:[%s373_s2] ss:$0 sm:$0xff]  ;;  %p305_p10 = scmp.ne.s32.totalorder %s195_s25, %s304_s26  ;;  %p310_p12 = scmp.lt.s32.totalorder %s304_s26, %s304_s26 }
  0x22   :  { %229 = vmatpush3.bf16.msra.mxu0 %v256_v2  ;;  %p311_p13 = por %p310_p12, %p309_p11 }
  0x23   :  { %230 = vmatprep.subr.bf16.mxu0 %v334_v0 }
  0x24   :  { %p312_p0 = pnand %p311_p13, %p305_p10 }
  0x26   :  { %231 = vmatpush3.bf16.msra.mxu0 %v257_v3 }
  0x27   :  { %232 = vmatprep.subr.bf16.mxu0 %v334_v0 }
  0x2a   :  { %233 = vmatpush3.bf16.msra.mxu0 %v258_v4 }
  0x2b   :  { %234 = vmatprep.subr.bf16.mxu0 %v334_v0 }
  0x2e   :  { %235 = vmatpush3.bf16.msra.mxu0 %v259_v5 }
  0x2f   :  { %236 = vmatprep.subr.bf16.mxu0 %v334_v0 }
  0x32   :  { %237 = vmatpush3.bf16.msra.mxu0 %v260_v6 }
  0x33   :  { %238 = vmatprep.subr.bf16.mxu0 %v334_v0 }
  0x36   :  { %239 = vmatpush3.bf16.msra.mxu0 %v261_v7 }
  0x37   :  { %240 = vmatprep.subr.bf16.mxu0 %v334_v0 }
  0x3a   :  { %241 = vmatpush3.bf16.msra.mxu0 %v262_v8 }
  0x3d   :  { %243 = vmatmul.mubr.bf16.vlgmr.msra.gmra.mxu0 %v263_v9 }
  0xfd   :  { %v150_v11 = vpop.f32.mrf.mxu0 }
  0xfe   :  { %v168_v12 = vadd.f32 %v216_v10, %v150_v11 }
  0xff   :  { %v244_v13 = vpop.f32.mrf.mxu0 }
 0x100   :  { %187 = vst [vmem:[#allocation8] sm:$0xff] %v168_v12 }
 0x101   :  { %v153_v14 = vpop.f32.mrf.mxu0 }
 0x102   :  { %v169_v15 = vadd.f32 %v216_v10, %v153_v14 }
 0x103   :  { %v245_v16 = vpop.f32.mrf.mxu0 }
 0x104   :  { %188 = vst [vmem:[#allocation8 + $0x8] sm:$0xff] %v169_v15 }
 0x105   :  { %315 = shalt.err (!%p312_p0)
}
 0x106   :  { %s337_s27 = smov 128   ;;  %s338_s2 = smov 8  }
 0x107   :  { %200 = dma.vmem_to_hbm [thread:$0]  %s195_s25, 256, %s374_s3, [#allocation5], %s337_s27, %s337_s27, %s338_s2  }
 0x108   :  { %328 = dma.done.wait [#allocation5], 256  }
 0x109   :  { %329 = vsyncadd [#allocation5], 4294967040 }
 0x10a   :  { %204 = vsyncpa [#allocation4], 1 }
 0x10b   :  { %205 = vsyncpa [#allocation7], 1 }
 0x10c   :  { %206 = vsyncpa [#allocation5], 1 }

</bundles_post_ra>
